<compile_context>
chip_gen: v7x
topology: tpu7x:2x2x1
jax: 0.10.0
libtpu: 0.0.40
codegen_flags: <defaults>
</compile_context>

<pallas_src>
import jax
import jax.numpy as jnp
from jax.experimental import pallas as pl
from jax.experimental.pallas import tpu as pltpu

# ---- model dims (small, deterministic synthetic config) ----
B = 16       # batch
S = 8        # sequence length
V = 32       # vocab size
E = 32       # embedding dim
H = 32       # middle (hidden) dim
C = 4        # number of relation classes
C_PAD = 128  # lane-padded classifier width (unmasked full-width store)

BB = B       # single grid step: all batch rows in one tile (B*S = 128 MXU rows)
assert B % BB == 0


def re_model_kernel(tok_ref, wf_ref, b1_ref, pool_ref, w2_ref, b2_ref, out_ref):
    # tok_ref  : [BB*S, 1]     int32  (token ids)
    # wf_ref   : [V, H]        f32    (fused emb @ w1)
    # b1_ref   : [1, H]        f32
    # pool_ref : [BB, BB*S]    f32    (mean-pool matrix, 1/S in block positions)
    # w2_ref   : [H, C_PAD]    f32    (zero-padded classifier weights)
    # b2_ref   : [1, C_PAD]    f32
    # out_ref  : [BB, C_PAD]   f32

    tok = tok_ref[...]                                              # [BB*S, 1]

    # --- EmbeddingLayer + MiddleLayer fused: tanh(onehot @ (emb @ w1) + b1) ---
    vocab_ids = jax.lax.broadcasted_iota(jnp.int32, (BB * S, V), 1)
    onehot = (tok == vocab_ids).astype(jnp.float32)                 # [BB*S, V]
    hidden = jnp.tanh(
        jnp.dot(onehot, wf_ref[...], preferred_element_type=jnp.float32)
        + b1_ref[...])                                              # [BB*S, H]

    # --- OutputLayer: mean-pool as an MXU matmul, then classifier dense ---
    pooled = jnp.dot(pool_ref[...], hidden,
                     preferred_element_type=jnp.float32)            # [BB, H]
    out_ref[...] = (jnp.dot(pooled, w2_ref[...],
                            preferred_element_type=jnp.float32)
                    + b2_ref[...])                                  # [BB, C_PAD]


@jax.jit
def re_model_forward(tokens, emb, w1, b1, w2, b2):
    """tokens: int32 [B, S] -> logits f32 [B, C]."""
    # Algebraic fusion of embedding + middle dense (tanh/bias come after, so
    # (onehot @ emb) @ w1 == onehot @ (emb @ w1)).
    w_fused = jnp.dot(emb, w1, preferred_element_type=jnp.float32)   # [V, H]

    # Lane-dense classifier: pad C -> C_PAD with zeros (constant-folds under jit).
    w2_pad = jnp.zeros((H, C_PAD), jnp.float32).at[:, :C].set(w2)
    b2_pad = jnp.zeros((1, C_PAD), jnp.float32).at[:, :C].set(b2.reshape(1, C))

    # Mean-pool matrix: P[b, b*S + s] = 1/S  (compile-time constant under jit).
    row_of = jnp.repeat(jnp.arange(BB, dtype=jnp.int32), S)          # [BB*S]
    pool = (jnp.arange(BB, dtype=jnp.int32)[:, None] == row_of[None, :]
            ).astype(jnp.float32) / float(S)                         # [BB, BB*S]

    tok_flat = tokens.reshape(B * S, 1).astype(jnp.int32)

    # Advisory cost hint: MXU flops + tanh transcendentals + ~38 KB of traffic.
    flops = 2 * (BB * S) * V * H + 2 * BB * (BB * S) * H + 2 * BB * H * C_PAD
    bytes_accessed = 4 * ((BB * S) * 1 + V * H + H + BB * (BB * S)
                          + H * C_PAD + C_PAD + BB * C_PAD)
    cost = pl.CostEstimate(flops=flops,
                           transcendentals=BB * S * H,
                           bytes_accessed=bytes_accessed)

    out_padded = pl.pallas_call(
        re_model_kernel,
        out_shape=jax.ShapeDtypeStruct((B, C_PAD), jnp.float32),
        grid=(1,),
        in_specs=[
            pl.BlockSpec((BB * S, 1), lambda i: (0, 0)),
            pl.BlockSpec((V, H), lambda i: (0, 0)),
            pl.BlockSpec((1, H), lambda i: (0, 0)),
            pl.BlockSpec((BB, BB * S), lambda i: (0, 0)),
            pl.BlockSpec((H, C_PAD), lambda i: (0, 0)),
            pl.BlockSpec((1, C_PAD), lambda i: (0, 0)),
        ],
        out_specs=pl.BlockSpec((BB, C_PAD), lambda i: (0, 0)),
        compiler_params=pltpu.CompilerParams(
            dimension_semantics=("arbitrary",)),
        cost_estimate=cost,
    )(tok_flat, w_fused, b1, pool, w2_pad, b2_pad)

    return out_padded[:, :C]


def _reference(tokens, emb, w1, b1, w2, b2):
    embed = emb[tokens]                                   # [B, S, E]
    hidden = jnp.tanh(embed @ w1 + b1)                    # [B, S, H]
    pooled = jnp.mean(hidden, axis=1)                     # [B, H]
    return pooled @ w2 + b2                               # [B, C]


if __name__ == "__main__":
    key = jax.random.PRNGKey(0)
    k_tok, k_emb, k_w1, k_b1, k_w2, k_b2 = jax.random.split(key, 6)

    tokens = jax.random.randint(k_tok, (B, S), 0, V, dtype=jnp.int32)
    emb = jax.random.normal(k_emb, (V, E), jnp.float32) * 0.1
    w1 = jax.random.normal(k_w1, (E, H), jnp.float32) * 0.1
    b1 = jax.random.normal(k_b1, (1, H), jnp.float32) * 0.1
    w2 = jax.random.normal(k_w2, (H, C), jnp.float32) * 0.1
    b2 = jax.random.normal(k_b2, (1, C), jnp.float32) * 0.1

    out = re_model_forward(tokens, emb, w1, b1, w2, b2)
    out = jax.block_until_ready(out)

    ref = _reference(tokens, emb, w1, b1, w2, b2)
    assert out.shape == (B, C)
    assert jnp.allclose(out, ref, atol=1e-5, rtol=1e-5), "mismatch vs reference"

    print("KERNEL_OK")
</pallas_src>

<mosaic_0001>
module attributes {stable_mosaic.version = 11 : i64} {
  func.func @re_model_kernel(%arg0: i32, %arg1: memref<128x1xi32, #tpu.memory_space<vmem>>, %arg2: memref<32x32xf32, #tpu.memory_space<vmem>>, %arg3: memref<1x32xf32, #tpu.memory_space<vmem>>, %arg4: memref<16x128xf32, #tpu.memory_space<vmem>>, %arg5: memref<32x128xf32, #tpu.memory_space<vmem>>, %arg6: memref<1x128xf32, #tpu.memory_space<vmem>>, %arg7: memref<16x128xf32, #tpu.memory_space<vmem>>) attributes {dimension_semantics = [#tpu.dimension_semantics<arbitrary>], iteration_bounds = array<i64: 1>, scalar_prefetch = 0 : i64, scratch_operands = 0 : i64, tpu.core_type = #tpu.core_type<tc>, window_params = [{pipeline_mode = #tpu.pipeline_mode<synchronous>, transform_indices = @transform_0, window_bounds = array<i64: 128, 1>}, {pipeline_mode = #tpu.pipeline_mode<synchronous>, transform_indices = @transform_1, window_bounds = array<i64: 32, 32>}, {pipeline_mode = #tpu.pipeline_mode<synchronous>, transform_indices = @transform_2, window_bounds = array<i64: 1, 32>}, {pipeline_mode = #tpu.pipeline_mode<synchronous>, transform_indices = @transform_3, window_bounds = array<i64: 16, 128>}, {pipeline_mode = #tpu.pipeline_mode<synchronous>, transform_indices = @transform_4, window_bounds = array<i64: 32, 128>}, {pipeline_mode = #tpu.pipeline_mode<synchronous>, transform_indices = @transform_5, window_bounds = array<i64: 1, 128>}, {pipeline_mode = #tpu.pipeline_mode<synchronous>, transform_indices = @transform_6, window_bounds = array<i64: 16, 128>}]} {
    %c0 = arith.constant 0 : index
    %c0_0 = arith.constant 0 : index
    %0 = vector.load %arg1[%c0, %c0_0] : memref<128x1xi32, #tpu.memory_space<vmem>>, vector<128x1xi32>
    %1 = tpu.iota {dimensions = array<i32: 1>} : vector<128x32xi32>
    %2 = vector.broadcast %0 : vector<128x1xi32> to vector<128x32xi32>
    %3 = arith.cmpi eq, %2, %1 : vector<128x32xi32>
    %4 = arith.extui %3 : vector<128x32xi1> to vector<128x32xi32>
    %5 = arith.sitofp %4 : vector<128x32xi32> to vector<128x32xf32>
    %c0_1 = arith.constant 0 : index
    %c0_2 = arith.constant 0 : index
    %6 = vector.load %arg2[%c0_1, %c0_2] : memref<32x32xf32, #tpu.memory_space<vmem>>, vector<32x32xf32>
    %cst = arith.constant dense<0.000000e+00> : vector<128x32xf32>
    %7 = tpu.matmul %5, %6, %cst {dimension_numbers = #tpu.dot_dimension_numbers<[1], [0], [0], [1], [0, 0, 1, 1], [], []>} : vector<128x32xf32>, vector<32x32xf32>, vector<128x32xf32> -> vector<128x32xf32>
    %c0_3 = arith.constant 0 : index
    %c0_4 = arith.constant 0 : index
    %8 = vector.load %arg3[%c0_3, %c0_4] : memref<1x32xf32, #tpu.memory_space<vmem>>, vector<1x32xf32>
    %9 = vector.broadcast %8 : vector<1x32xf32> to vector<128x32xf32>
    %10 = arith.addf %7, %9 : vector<128x32xf32>
    %11 = math.tanh %10 : vector<128x32xf32>
    %c0_5 = arith.constant 0 : index
    %c0_6 = arith.constant 0 : index
    %12 = vector.load %arg4[%c0_5, %c0_6] : memref<16x128xf32, #tpu.memory_space<vmem>>, vector<16x128xf32>
    %cst_7 = arith.constant dense<0.000000e+00> : vector<16x32xf32>
    %13 = tpu.matmul %12, %11, %cst_7 {dimension_numbers = #tpu.dot_dimension_numbers<[1], [0], [0], [1], [0, 0, 1, 1], [], []>} : vector<16x128xf32>, vector<128x32xf32>, vector<16x32xf32> -> vector<16x32xf32>
    %c0_8 = arith.constant 0 : index
    %c0_9 = arith.constant 0 : index
    %14 = vector.load %arg5[%c0_8, %c0_9] : memref<32x128xf32, #tpu.memory_space<vmem>>, vector<32x128xf32>
    %cst_10 = arith.constant dense<0.000000e+00> : vector<16x128xf32>
    %15 = tpu.matmul %13, %14, %cst_10 {dimension_numbers = #tpu.dot_dimension_numbers<[1], [0], [0], [1], [0, 0, 1, 1], [], []>} : vector<16x32xf32>, vector<32x128xf32>, vector<16x128xf32> -> vector<16x128xf32>
    %c0_11 = arith.constant 0 : index
    %c0_12 = arith.constant 0 : index
    %16 = vector.load %arg6[%c0_11, %c0_12] : memref<1x128xf32, #tpu.memory_space<vmem>>, vector<1x128xf32>
    %17 = vector.broadcast %16 : vector<1x128xf32> to vector<16x128xf32>
    %18 = arith.addf %15, %17 : vector<16x128xf32>
    %c0_13 = arith.constant 0 : index
    %c0_14 = arith.constant 0 : index
    %19 = vector.load %arg7[%c0_13, %c0_14] : memref<16x128xf32, #tpu.memory_space<vmem>>, vector<16x128xf32>
    tpu.vector_store %arg7[%c0_13, %c0_14], %18 {strides = array<i32>} : memref<16x128xf32, #tpu.memory_space<vmem>>, vector<16x128xf32>,
    return
  }
  func.func @transform_0(%arg0: i32) -> (i32, i32) {
    %c0_i32 = arith.constant 0 : i32
    %c0_i32_0 = arith.constant 0 : i32
    %c0_i32_1 = arith.constant 0 : i32
    return %c0_i32, %c0_i32_0 : i32, i32
  }
  func.func @transform_1(%arg0: i32) -> (i32, i32) {
    %c0_i32 = arith.constant 0 : i32
    %c0_i32_0 = arith.constant 0 : i32
    %c0_i32_1 = arith.constant 0 : i32
    return %c0_i32, %c0_i32_0 : i32, i32
  }
  func.func @transform_2(%arg0: i32) -> (i32, i32) {
    %c0_i32 = arith.constant 0 : i32
    %c0_i32_0 = arith.constant 0 : i32
    %c0_i32_1 = arith.constant 0 : i32
    return %c0_i32, %c0_i32_0 : i32, i32
  }
  func.func @transform_3(%arg0: i32) -> (i32, i32) {
    %c0_i32 = arith.constant 0 : i32
    %c0_i32_0 = arith.constant 0 : i32
    %c0_i32_1 = arith.constant 0 : i32
    return %c0_i32, %c0_i32_0 : i32, i32
  }
  func.func @transform_4(%arg0: i32) -> (i32, i32) {
    %c0_i32 = arith.constant 0 : i32
    %c0_i32_0 = arith.constant 0 : i32
    %c0_i32_1 = arith.constant 0 : i32
    return %c0_i32, %c0_i32_0 : i32, i32
  }
  func.func @transform_5(%arg0: i32) -> (i32, i32) {
    %c0_i32 = arith.constant 0 : i32
    %c0_i32_0 = arith.constant 0 : i32
    %c0_i32_1 = arith.constant 0 : i32
    return %c0_i32, %c0_i32_0 : i32, i32
  }
  func.func @transform_6(%arg0: i32) -> (i32, i32) {
    %c0_i32 = arith.constant 0 : i32
    %c0_i32_0 = arith.constant 0 : i32
    %c0_i32_1 = arith.constant 0 : i32
    return %c0_i32, %c0_i32_0 : i32, i32
  }
}

</mosaic_0001>

<bundles_post_ra>
// kernel: eq.11
= control target key start
LH: loop header
LB: loop body
LE: loop exit
PB: predicated region body
PF: predicated region fallthrough
CT: control target
= control target key end

     0   :  { %s131_s10 = smov 120   ;;  %s132_s11 = smov 104   ;;  %vm3_vm0 = vcmask 64512   ;;  %vm9_vm1 = vcmask 1048512   ;;  %vm15_vm2 = vcmask 982912   ;;  %vm21_vm3 = vcmask 917312   ;;  %s207_s0 = inlined_call_operand.vmem [shape: s32[16,8], index: 0, kind: input, shape index: {}]   ;;  %s208_s1 = inlined_call_operand.vmem [shape: s32[128], index: 1, kind: output, shape index: {}]  }
   0x1   :  { %v101_v0 = vld [vmem:[%s207_s0 + $0xf] sm:$0x1]   ;;  %v103_v1 = vld [vmem:[%s207_s0 + $0xd] sm:$0x1]   ;;  %v102_v2 = vld [vmem:[%s207_s0 + $0xe] sm:$0x1]  }
   0x2   :  { %7 = vrot.lane.b32.xlu0 %v101_v0, %s131_s10  ;;  %19 = vrot.lane.b32.xlu1 %v103_v1, %s132_s11  ;;  %v104_v3 = vld [vmem:[%s207_s0 + $0xc] sm:$0x1]   ;;  %s133_s16 = smov 112   ;;  %s134_s17 = smov 96   ;;  %v105_v4 = vld [vmem:[%s207_s0 + $0xb] sm:$0x1]  }
   0x3   :  { %v106_v5 = vld [vmem:[%s207_s0 + $0xa] sm:$0x1]   ;;  %v2_v6 = vld [vmem:[%s207_s0] sm:$0x1]   ;;  %s135_s24 = smov 88   ;;  %s136_s25 = smov 80  }
   0x4   :  { %4 = vst.msk [vmem:[#allocation0] sm:$0x1] %vm3_vm0, %v2_v6   ;;  %v107_v7 = vld [vmem:[%s207_s0 + $0x9] sm:$0x1]   ;;  %v108_v8 = vld [vmem:[%s207_s0 + $0x8] sm:$0x1]  }
   0x5   :  { %s137_s30 = smov 72   ;;  %s138_s2 = smov 64   ;;  %v109_v9 = vld [vmem:[%s207_s0 + $0x7] sm:$0x1]   ;;  %v110_v10 = vld [vmem:[%s207_s0 + $0x6] sm:$0x1]  }
   0x6   :  { %13 = vrot.lane.b32.xlu0 %v102_v2, %s133_s16  ;;  %25 = vrot.lane.b32.xlu1 %v104_v3, %s134_s17  ;;  %s139_s7 = smov 56   ;;  %s140_s8 = smov 48   ;;  %v111_v11 = vld [vmem:[%s207_s0 + $0x5] sm:$0x1]   ;;  %v112_v12 = vld [vmem:[%s207_s0 + $0x4] sm:$0x1]  }
   0x7   :  { %s141_s13 = smov 40   ;;  %s142_s14 = smov 32   ;;  %v113_v13 = vld [vmem:[%s207_s0 + $0x3] sm:$0x1]   ;;  %v114_v14 = vld [vmem:[%s207_s0 + $0x2] sm:$0x1]  }
   0x8   :  { %s143_s19 = smov 24   ;;  %s144_s20 = smov 16   ;;  %v115_v15 = vld [vmem:[%s207_s0 + $0x1] sm:$0x1]   ;;  %vm27_vm4 = vcmask 851712   ;;  %vm33_vm5 = vcmask 786112  }
   0x9   :  { %s145_s0 = smov 8   ;;  %vm39_vm6 = vcmask 720512   ;;  %vm45_vm7 = vcmask 654912   ;;  %vm51_vm8 = vcmask 589312   ;;  %vm57_vm9 = vcmask 523712  }
   0xa   :  { %31 = vrot.lane.b32.xlu0 %v105_v4, %s135_s24  ;;  %37 = vrot.lane.b32.xlu1 %v106_v5, %s136_s25  ;;  %vm63_vm10 = vcmask 458112   ;;  %vm69_vm11 = vcmask 392512   ;;  %vm75_vm12 = vcmask 326912   ;;  %vm81_vm13 = vcmask 261312  }
   0xb   :  { %vm87_vm14 = vcmask 195712   ;;  %vm93_vm15 = vcmask 130112  }
   0xe   :  { %43 = vrot.lane.b32.xlu0 %v107_v7, %s137_s30  ;;  %49 = vrot.lane.b32.xlu1 %v108_v8, %s138_s2 }
  0x12   :  { %55 = vrot.lane.b32.xlu0 %v109_v9, %s139_s7  ;;  %61 = vrot.lane.b32.xlu1 %v110_v10, %s140_s8 }
  0x16   :  { %67 = vrot.lane.b32.xlu0 %v111_v11, %s141_s13  ;;  %73 = vrot.lane.b32.xlu1 %v112_v12, %s142_s14 }
  0x1a   :  { %79 = vrot.lane.b32.xlu0 %v113_v13, %s143_s19  ;;  %85 = vrot.lane.b32.xlu1 %v114_v14, %s144_s20 }
  0x1e   :  { %91 = vrot.lane.b32.xlu0 %v115_v15, %s145_s0 }
  0x74   :  { %v8_v16 = vpop.permute.xlu0 %7   ;;  %v20_v17 = vpop.permute.xlu1 %19  }
  0x75   :  { %10 = vst.msk [vmem:[#allocation0] sm:$0x1] %vm9_vm1, %v8_v16  }
  0x78   :  { %v14_v18 = vpop.permute.xlu0 %13   ;;  %v26_v19 = vpop.permute.xlu1 %25  }
  0x79   :  { %16 = vst.msk [vmem:[#allocation0] sm:$0x1] %vm15_vm2, %v14_v18  }
  0x7a   :  { %22 = vst.msk [vmem:[#allocation0] sm:$0x1] %vm21_vm3, %v20_v17  }
  0x7b   :  { %28 = vst.msk [vmem:[#allocation0] sm:$0x1] %vm27_vm4, %v26_v19  }
  0x7c   :  { %v32_v20 = vpop.permute.xlu0 %31   ;;  %v38_v21 = vpop.permute.xlu1 %37  }
  0x7d   :  { %34 = vst.msk [vmem:[#allocation0] sm:$0x1] %vm33_vm5, %v32_v20  }
  0x7e   :  { %40 = vst.msk [vmem:[#allocation0] sm:$0x1] %vm39_vm6, %v38_v21  }
  0x80   :  { %v44_v22 = vpop.permute.xlu0 %43   ;;  %v50_v23 = vpop.permute.xlu1 %49  }
  0x81   :  { %46 = vst.msk [vmem:[#allocation0] sm:$0x1] %vm45_vm7, %v44_v22  }
  0x82   :  { %52 = vst.msk [vmem:[#allocation0] sm:$0x1] %vm51_vm8, %v50_v23  }
  0x84   :  { %v56_v24 = vpop.permute.xlu0 %55   ;;  %v62_v25 = vpop.permute.xlu1 %61  }
  0x85   :  { %58 = vst.msk [vmem:[#allocation0] sm:$0x1] %vm57_vm9, %v56_v24  }
  0x86   :  { %64 = vst.msk [vmem:[#allocation0] sm:$0x1] %vm63_vm10, %v62_v25  }
  0x88   :  { %v68_v26 = vpop.permute.xlu0 %67   ;;  %v74_v27 = vpop.permute.xlu1 %73  }
  0x89   :  { %70 = vst.msk [vmem:[#allocation0] sm:$0x1] %vm69_vm11, %v68_v26  }
  0x8a   :  { %76 = vst.msk [vmem:[#allocation0] sm:$0x1] %vm75_vm12, %v74_v27  }
  0x8c   :  { %v80_v28 = vpop.permute.xlu0 %79   ;;  %v86_v29 = vpop.permute.xlu1 %85  }
  0x8d   :  { %82 = vst.msk [vmem:[#allocation0] sm:$0x1] %vm81_vm13, %v80_v28  }
  0x8e   :  { %88 = vst.msk [vmem:[#allocation0] sm:$0x1] %vm87_vm14, %v86_v29  }
  0x90   :  { %v92_v30 = vpop.permute.xlu0 %91  }
  0x91   :  { %94 = vst.msk [vmem:[#allocation0] sm:$0x1] %vm93_vm15, %v92_v30  }
  0x98   :  { %v98_v31 = vld [vmem:[#allocation0] sm:$0x1] }
  0x99   :  { %100 = vst [vmem:[%s208_s1] sm:$0x1] %v98_v31 }

// kernel: re_model_forward.1
= control target key start
LH: loop header
LB: loop body
LE: loop exit
PB: predicated region body
PF: predicated region fallthrough
CT: control target
= control target key end

     0   :  { %v775_v0 = vmov 0   ;;  %v39_v23 = vlaneseq  ;;  %vm148_vm0 = vcmask 261120   ;;  %v776_v27 = vmov 0.0   ;;  %s956_s0 = inlined_call_operand.vmem [shape: s32[128,1], index: 0, kind: input, shape index: {}]   ;;  %s957_s1 = inlined_call_operand.vmem [shape: f32[32,32], index: 1, kind: input, shape index: {}]   ;;  %s958_s3 = inlined_call_operand.vmem [shape: f32[16,128], index: 3, kind: input, shape index: {}]   ;;  %s959_s4 = inlined_call_operand.vmem [shape: f32[32,128], index: 4, kind: input, shape index: {}]   ;;  %s960_s2 = inlined_call_operand.vmem [shape: f32[1,32], index: 2, kind: input, shape index: {}]   ;;  %s961_s5 = inlined_call_operand.vmem [shape: f32[1,128], index: 5, kind: input, shape index: {}]   ;;  %s962_s6 = inlined_call_operand.vmem [shape: f32[16,128], index: 6, kind: output, shape index: {}]  }
   0x1   :  { %742 = vset.pattern.permute.xlu1 %v775_v0  ;;  %741 = vset.pattern.permute.xlu0 %v775_v0  ;;  %v25_v1 = vld [vmem:[%s956_s0 + $0x10] sm:$0xff]  ;;  %v23_v2 = vld [vmem:[%s956_s0] sm:$0xff]  ;;  %v26_v3 = vld [vmem:[%s956_s0 + $0x18] sm:$0xff] }
   0x2   :  { %48 = vperm.xlu1 %742, %v25_v1   ;;  %42 = vperm.xlu0 %741, %v23_v2   ;;  %v24_v4 = vld [vmem:[%s956_s0 + $0x8] sm:$0xff]  ;;  %v137_v6 = vld [vmem:[%s957_s1] sm:$0xff]  ;;  %v139_v10 = vld [vmem:[%s957_s1 + $0x10] sm:$0xff]  ;;  %v872_v24 = vand.u32 127, %v39_v23 }
   0x3   :  { %v28_v5 = vld [vmem:[%s956_s0 + $0x28] sm:$0xff]  ;;  %v27_v8 = vld [vmem:[%s956_s0 + $0x20] sm:$0xff]  ;;  %v140_v11 = vld [vmem:[%s957_s1 + $0x18] sm:$0xff] }
   0x4   :  { %v138_v7 = vld [vmem:[%s957_s1 + $0x8] sm:$0xff]  ;;  %v695_v12 = vpack.c.bf16 %v140_v11, %v139_v10  ;;  %v30_v13 = vld [vmem:[%s956_s0 + $0x38] sm:$0xff]  ;;  %v29_v14 = vld [vmem:[%s956_s0 + $0x30] sm:$0xff] }
   0x5   :  { %v691_v9 = vpack.c.bf16 %v138_v7, %v137_v6  ;;  %v32_v15 = vld [vmem:[%s956_s0 + $0x48] sm:$0xff]  ;;  %v31_v16 = vld [vmem:[%s956_s0 + $0x40] sm:$0xff]  ;;  %v34_v17 = vld [vmem:[%s956_s0 + $0x58] sm:$0xff] }
   0x6   :  { %51 = vperm.xlu1 %742, %v26_v3   ;;  %45 = vperm.xlu0 %741, %v24_v4   ;;  %v33_v18 = vld [vmem:[%s956_s0 + $0x50] sm:$0xff]  ;;  %v36_v19 = vld [vmem:[%s956_s0 + $0x68] sm:$0xff]  ;;  %v35_v20 = vld [vmem:[%s956_s0 + $0x60] sm:$0xff] }
   0x7   :  { %692 = vmatprep.subr.bf16.mxu0 %v691_v9  ;;  %v38_v21 = vld [vmem:[%s956_s0 + $0x78] sm:$0xff]  ;;  %v37_v22 = vld [vmem:[%s956_s0 + $0x70] sm:$0xff]  ;;  %v358_v58 = vld [vmem:[%s958_s3] sm:$0xff] }
   0x8   :  { %694 = vmatpush3.bf16.msra.mxu0 %v691_v9  ;;  %677 = vmatprep.mubr.f32.mxu1 %v358_v58  ;;  %v435_v59 = vld [vmem:[%s959_s4] sm:$0xff]  ;;  %v436_v60 = vld [vmem:[%s959_s4 + $0x8] sm:$0xff]  ;;  %v437_v61 = vld [vmem:[%s959_s4 + $0x10] sm:$0xff] }
   0x9   :  { %696 = vmatprep.subr.bf16.mxu0 %v695_v12  ;;  %v731_v62 = vpack.c.bf16 %v436_v60, %v435_v59  ;;  %v438_v63 = vld [vmem:[%s959_s4 + $0x18] sm:$0xff]  ;;  %v924_v1 = vld [vmem:[%s960_s2] ss:$0 sm:$0xff]  ;;  %v359_v58 = vld [vmem:[%s958_s3 + $0x8] sm:$0xff] }
   0xa   :  { %57 = vperm.xlu1 %742, %v28_v5   ;;  %54 = vperm.xlu0 %741, %v27_v8   ;;  %v735_v0 = vpack.c.bf16 %v438_v63, %v437_v61  ;;  %v566_v61 = vld [vmem:[%s961_s5] ss:$0 sm:$0xff] }
   0xc   :  { %698 = vmatpush3.bf16.msra.mxu0 %v695_v12 }
   0xd   :  { %732 = vmatprep.subr.bf16.mxu0 %v731_v62 }
   0xe   :  { %63 = vperm.xlu1 %742, %v30_v13   ;;  %60 = vperm.xlu0 %741, %v29_v14  }
  0x12   :  { %69 = vperm.xlu1 %742, %v32_v15   ;;  %66 = vperm.xlu0 %741, %v31_v16  }
  0x16   :  { %75 = vperm.xlu1 %742, %v34_v17   ;;  %72 = vperm.xlu0 %741, %v33_v18  }
  0x1a   :  { %81 = vperm.xlu1 %742, %v36_v19   ;;  %78 = vperm.xlu0 %741, %v35_v20  }
  0x1e   :  { %87 = vperm.xlu1 %742, %v38_v21   ;;  %84 = vperm.xlu0 %741, %v37_v22  }
  0x81   :  { %v49_v25 = vpop.permute.xlu1 %48  ;;  %v43_v26 = vpop.permute.xlu0 %42 }
  0x82   :  { %vm89_vm1 = vcmp.eq.s32.totalorder %v43_v26, %v872_v24  ;;  %vm91_vm2 = vcmp.eq.s32.totalorder %v49_v25, %v872_v24 }
  0x83   :  { %v533_v28 = vsel %vm89_vm1, 1.0, %v776_v27  ;;  %v535_v31 = vsel %vm91_vm2, 1.0, %v776_v27 }
  0x84   :  { %621 = vmatprep.mubr.msk.f32.mxu0 %vm148_vm0, %v533_v28 }
  0x85   :  { %v52_v29 = vpop.permute.xlu1 %51  ;;  %v46_v30 = vpop.permute.xlu0 %45 }
  0x86   :  { %vm90_vm3 = vcmp.eq.s32.totalorder %v46_v30, %v872_v24  ;;  %vm92_vm4 = vcmp.eq.s32.totalorder %v52_v29, %v872_v24 }
  0x87   :  { %v534_v32 = vsel %vm90_vm3, 1.0, %v776_v27  ;;  %v536_v35 = vsel %vm92_vm4, 1.0, %v776_v27 }
  0x88   :  { %622 = vmatmul.mubr.msk.f32.vlgmr.msra.gmra.mrb[0].mxu0 %vm148_vm0, %v534_v32 }
  0x89   :  { %v58_v33 = vpop.permute.xlu1 %57  ;;  %624 = vmatprep.mubr.msk.f32.mxu0 %vm148_vm0, %v535_v31  ;;  %v55_v34 = vpop.permute.xlu0 %54  ;;  %734 = vmatpush3.bf16.msra.mxu0 %v731_v62 }
  0x8a   :  { %vm93_vm5 = vcmp.eq.s32.totalorder %v55_v34, %v872_v24  ;;  %vm94_vm6 = vcmp.eq.s32.totalorder %v58_v33, %v872_v24  ;;  %736 = vmatprep.subr.bf16.mxu0 %v735_v0 }
  0x8b   :  { %v537_v36 = vsel %vm93_vm5, 1.0, %v776_v27  ;;  %v538_v39 = vsel %vm94_vm6, 1.0, %v776_v27 }
  0x8c   :  { %625 = vmatmul.mubr.msk.f32.gmra.mrb[2].mxu0 %vm148_vm0, %v536_v35 }
  0x8d   :  { %v64_v37 = vpop.permute.xlu1 %63  ;;  %627 = vmatprep.mubr.msk.f32.mxu0 %vm148_vm0, %v537_v36  ;;  %v61_v38 = vpop.permute.xlu0 %60  ;;  %738 = vmatpush3.bf16.msra.mxu0 %v735_v0 }
  0x8e   :  { %vm95_vm7 = vcmp.eq.s32.totalorder %v61_v38, %v872_v24  ;;  %vm96_vm8 = vcmp.eq.s32.totalorder %v64_v37, %v872_v24 }
  0x8f   :  { %v539_v40 = vsel %vm95_vm7, 1.0, %v776_v27  ;;  %v540_v43 = vsel %vm96_vm8, 1.0, %v776_v27 }
  0x90   :  { %628 = vmatmul.mubr.msk.f32.gmra.mrb[4].mxu0 %vm148_vm0, %v538_v39 }
  0x91   :  { %v70_v41 = vpop.permute.xlu1 %69  ;;  %630 = vmatprep.mubr.msk.f32.mxu0 %vm148_vm0, %v539_v40  ;;  %v67_v42 = vpop.permute.xlu0 %66 }
  0x92   :  { %vm97_vm9 = vcmp.eq.s32.totalorder %v67_v42, %v872_v24  ;;  %vm98_vm10 = vcmp.eq.s32.totalorder %v70_v41, %v872_v24 }
  0x93   :  { %v541_v44 = vsel %vm97_vm9, 1.0, %v776_v27  ;;  %v542_v47 = vsel %vm98_vm10, 1.0, %v776_v27 }
  0x94   :  { %631 = vmatmul.mubr.msk.f32.gmra.mrb[6].mxu0 %vm148_vm0, %v540_v43 }
  0x95   :  { %v76_v45 = vpop.permute.xlu1 %75  ;;  %633 = vmatprep.mubr.msk.f32.mxu0 %vm148_vm0, %v541_v44  ;;  %v73_v46 = vpop.permute.xlu0 %72 }
  0x96   :  { %vm99_vm11 = vcmp.eq.s32.totalorder %v73_v46, %v872_v24  ;;  %vm100_vm12 = vcmp.eq.s32.totalorder %v76_v45, %v872_v24 }
  0x97   :  { %v543_v48 = vsel %vm99_vm11, 1.0, %v776_v27  ;;  %v544_v51 = vsel %vm100_vm12, 1.0, %v776_v27 }
  0x98   :  { %634 = vmatmul.mubr.msk.f32.gmra.mrb[8].mxu0 %vm148_vm0, %v542_v47 }
  0x99   :  { %v82_v49 = vpop.permute.xlu1 %81  ;;  %636 = vmatprep.mubr.msk.f32.mxu0 %vm148_vm0, %v543_v48  ;;  %v79_v50 = vpop.permute.xlu0 %78 }
  0x9a   :  { %vm101_vm13 = vcmp.eq.s32.totalorder %v79_v50, %v872_v24  ;;  %vm102_vm14 = vcmp.eq.s32.totalorder %v82_v49, %v872_v24 }
  0x9b   :  { %v545_v52 = vsel %vm101_vm13, 1.0, %v776_v27  ;;  %v546_v55 = vsel %vm102_vm14, 1.0, %v776_v27 }
  0x9c   :  { %637 = vmatmul.mubr.msk.f32.gmra.mrb[10].mxu0 %vm148_vm0, %v544_v51 }
  0x9d   :  { %v88_v53 = vpop.permute.xlu1 %87  ;;  %639 = vmatprep.mubr.msk.f32.mxu0 %vm148_vm0, %v545_v52  ;;  %v85_v54 = vpop.permute.xlu0 %84 }
  0x9e   :  { %vm103_vm15 = vcmp.eq.s32.totalorder %v85_v54, %v872_v24  ;;  %vm104_vm1 = vcmp.eq.s32.totalorder %v88_v53, %v872_v24 }
  0x9f   :  { %v547_v56 = vsel %vm103_vm15, 1.0, %v776_v27  ;;  %v548_v57 = vsel %vm104_vm1, 1.0, %v776_v27 }
  0xa0   :  { %640 = vmatmul.mubr.msk.f32.gmra.mrb[12].mxu0 %vm148_vm0, %v546_v55 }
  0xa1   :  { %642 = vmatprep.mubr.msk.f32.mxu0 %vm148_vm0, %v547_v56 }
  0xa4   :  { %643 = vmatmul.mubr.msk.f32.gmra.mrb[14].mxu0 %vm148_vm0, %v548_v57 }
 0x15b   :  { %v623_v2 = vpop.f32.mrb[0].mxu0 }
 0x15c   :  { %v269_v3 = vadd.f32 %v623_v2, %v924_v1  ;;  %v263_v4 = vpop.f32.mrb[1].mxu0 }
 0x15d   :  { %v264_v5 = vadd.f32 %v924_v1, %v263_v4 }
 0x15e   :  { %743 = vtanh.f32 %v269_v3 }
 0x15f   :  { %745 = vtanh.f32 %v264_v5  ;;  %v626_v6 = vpop.f32.mrb[2].mxu0 }
 0x160   :  { %v279_v7 = vadd.f32 %v626_v6, %v924_v1  ;;  %v273_v8 = vpop.f32.mrb[3].mxu0 }
 0x161   :  { %v274_v9 = vadd.f32 %v924_v1, %v273_v8 }
 0x162   :  { %747 = vtanh.f32 %v279_v7 }
 0x163   :  { %749 = vtanh.f32 %v274_v9  ;;  %v629_v10 = vpop.f32.mrb[4].mxu0 }
 0x164   :  { %v289_v11 = vadd.f32 %v629_v10, %v924_v1  ;;  %v283_v12 = vpop.f32.mrb[5].mxu0 }
 0x165   :  { %v284_v13 = vadd.f32 %v924_v1, %v283_v12 }
 0x166   :  { %751 = vtanh.f32 %v289_v11 }
 0x167   :  { %753 = vtanh.f32 %v284_v13  ;;  %v632_v14 = vpop.f32.mrb[6].mxu0 }
 0x168   :  { %v744_v15 = vpop.eup %743  ;;  %v299_v16 = vadd.f32 %v632_v14, %v924_v1  ;;  %v293_v17 = vpop.f32.mrb[7].mxu0 }
 0x169   :  { %v746_v18 = vpop.eup %745  ;;  %v294_v19 = vadd.f32 %v924_v1, %v293_v17 }
 0x16a   :  { %755 = vtanh.f32 %v299_v16  ;;  %v699_v20 = vpack.c.bf16 %v744_v15, %v746_v18 }
 0x16b   :  { %757 = vtanh.f32 %v294_v19  ;;  %v635_v21 = vpop.f32.mrb[8].mxu0 }
 0x16c   :  { %v748_v22 = vpop.eup %747  ;;  %v309_v23 = vadd.f32 %v635_v21, %v924_v1  ;;  %v303_v24 = vpop.f32.mrb[9].mxu0  ;;  %700 = vmatprep.subr.bf16.mxu1 %v699_v20 }
 0x16d   :  { %v750_v25 = vpop.eup %749  ;;  %v304_v26 = vadd.f32 %v924_v1, %v303_v24  ;;  %702 = vmatpush3.bf16.msra.mxu1 %v699_v20 }
 0x16e   :  { %759 = vtanh.f32 %v309_v23  ;;  %v703_v27 = vpack.c.bf16 %v748_v22, %v750_v25 }
 0x16f   :  { %761 = vtanh.f32 %v304_v26  ;;  %v638_v28 = vpop.f32.mrb[10].mxu0 }
 0x170   :  { %v752_v29 = vpop.eup %751  ;;  %v319_v30 = vadd.f32 %v638_v28, %v924_v1  ;;  %v313_v31 = vpop.f32.mrb[11].mxu0  ;;  %704 = vmatprep.subr.bf16.mxu1 %v703_v27 }
 0x171   :  { %v754_v32 = vpop.eup %753  ;;  %v314_v33 = vadd.f32 %v924_v1, %v313_v31  ;;  %706 = vmatpush3.bf16.msra.mxu1 %v703_v27 }
 0x172   :  { %763 = vtanh.f32 %v319_v30  ;;  %v707_v34 = vpack.c.bf16 %v752_v29, %v754_v32 }
 0x173   :  { %765 = vtanh.f32 %v314_v33  ;;  %v641_v35 = vpop.f32.mrb[12].mxu0 }
 0x174   :  { %v756_v36 = vpop.eup %755  ;;  %v329_v37 = vadd.f32 %v641_v35, %v924_v1  ;;  %v323_v38 = vpop.f32.mrb[13].mxu0  ;;  %708 = vmatprep.subr.bf16.mxu1 %v707_v34 }
 0x175   :  { %v758_v39 = vpop.eup %757  ;;  %v324_v40 = vadd.f32 %v924_v1, %v323_v38  ;;  %710 = vmatpush3.bf16.msra.mxu1 %v707_v34 }
 0x176   :  { %767 = vtanh.f32 %v329_v37  ;;  %v711_v41 = vpack.c.bf16 %v756_v36, %v758_v39 }
 0x177   :  { %769 = vtanh.f32 %v324_v40  ;;  %v644_v42 = vpop.f32.mrb[14].mxu0 }
 0x178   :  { %v760_v43 = vpop.eup %759  ;;  %v339_v44 = vadd.f32 %v644_v42, %v924_v1  ;;  %v333_v45 = vpop.f32.mrb[15].mxu0  ;;  %712 = vmatprep.subr.bf16.mxu1 %v711_v41 }
 0x179   :  { %v762_v46 = vpop.eup %761  ;;  %v334_v47 = vadd.f32 %v924_v1, %v333_v45  ;;  %714 = vmatpush3.bf16.msra.mxu1 %v711_v41 }
 0x17a   :  { %771 = vtanh.f32 %v339_v44  ;;  %v715_v48 = vpack.c.bf16 %v760_v43, %v762_v46 }
 0x17b   :  { %773 = vtanh.f32 %v334_v47 }
 0x17c   :  { %v764_v49 = vpop.eup %763  ;;  %716 = vmatprep.subr.bf16.mxu1 %v715_v48 }
 0x17d   :  { %v766_v50 = vpop.eup %765  ;;  %718 = vmatpush3.bf16.msra.mxu1 %v715_v48 }
 0x17e   :  { %v719_v51 = vpack.c.bf16 %v764_v49, %v766_v50 }
 0x180   :  { %v768_v52 = vpop.eup %767  ;;  %720 = vmatprep.subr.bf16.mxu1 %v719_v51 }
 0x181   :  { %v770_v53 = vpop.eup %769  ;;  %722 = vmatpush3.bf16.msra.mxu1 %v719_v51 }
 0x182   :  { %v723_v54 = vpack.c.bf16 %v768_v52, %v770_v53 }
 0x184   :  { %v772_v55 = vpop.eup %771  ;;  %724 = vmatprep.subr.bf16.mxu1 %v723_v54 }
 0x185   :  { %v774_v56 = vpop.eup %773  ;;  %726 = vmatpush3.bf16.msra.mxu1 %v723_v54 }
 0x186   :  { %v727_v57 = vpack.c.bf16 %v772_v55, %v774_v56 }
 0x188   :  { %728 = vmatprep.subr.bf16.mxu1 %v727_v57 }
 0x189   :  { %730 = vmatpush3.bf16.msra.mxu1 %v727_v57 }
 0x18c   :  { %678 = vmatmul.mubr.f32.vlgmr.msra.gmra.mrb[0].mxu1 %v359_v58 }
 0x25f   :  { %v679_v59 = vpop.f32.mrb[0].mxu1 }
 0x260   :  { %v426_v60 = vpop.f32.mrb[1].mxu1 }
 0x261   :  { %688 = vmatprep.mubr.msk.f32.mxu0 %vm148_vm0, %v426_v60 }
 0x262   :  { %689 = vmatmul.mubr.msk.f32.vlgmr.msra.gmra.mrb[16].mxu0 %vm148_vm0, %v679_v59 }
 0x335   :  { %v690_v62 = vpop.f32.mrb[16].mxu0 }
 0x336   :  { %v524_v63 = vadd.f32 %v690_v62, %v566_v61  ;;  %v518_v0 = vpop.f32.mrb[17].mxu0 }
 0x337   :  { %v519_v1 = vadd.f32 %v566_v61, %v518_v0 }
 0x338   :  { %528 = vst [vmem:[%s962_s6 + $0x8] sm:$0xff] %v524_v63 }
 0x339   :  { %527 = vst [vmem:[%s962_s6] sm:$0xff] %v519_v1 }

</bundles_post_ra>
